<compile_context>
chip_gen: v6e
topology: v6e:2x2x1
jax: 0.10.0
libtpu: 0.0.40
codegen_flags: <defaults>
</compile_context>

<pallas_src>
import jax
import jax.numpy as jnp
from jax.experimental import pallas as pl
from jax.experimental.pallas import tpu as pltpu

H_PAD = 128   # padded hidden / output lane width (lane-dense activations)
REAL_H = 64   # real hidden width of ANet3 (fc1 / fc3 / action_out all use 64)


def _round_up(x, m):
    return ((x + m - 1) // m) * m


def make_anet3_kernel(p1):
    """p1 = padded o_dim (multiple of 32). Computes one (TB, a_dim) output tile."""

    def kernel(obs_ref, params_ref, out_ref):
        w_dtype = params_ref.dtype
        x = obs_ref[...].astype(w_dtype)

        # Static, row-aligned views into the single resident parameter slab.
        w1 = params_ref[pl.ds(0, p1), :]                    # (p1, 128)
        w3 = params_ref[pl.ds(p1, H_PAD), :]                # (128, 128)
        wa = params_ref[pl.ds(p1 + H_PAD, H_PAD), :]        # (128, 128)
        # All three biases in one (8,128) block: rows 0/1/2 = b1/b3/ba.
        bias = params_ref[pl.ds(p1 + 2 * H_PAD, 8), :]
        b1 = bias[0:1, :]
        b3 = bias[1:2, :]
        ba = bias[2:3, :]

        # fc1 + relu   (accumulate f32; relu/add stay f32 -> safe on v5e)
        h = jnp.dot(x, w1, preferred_element_type=jnp.float32) + b1
        h = jnp.maximum(h, 0.0).astype(w_dtype)
        # fc3 + relu   (fc2 is unused in ANet3.forward)
        h = jnp.dot(h, w3, preferred_element_type=jnp.float32) + b3
        h = jnp.maximum(h, 0.0).astype(w_dtype)
        # action_out + tanh  (tanh in f32 on the EUP)
        h = jnp.dot(h, wa, preferred_element_type=jnp.float32) + ba
        a = jnp.tanh(h)
        # Store only the real a_dim lanes (narrow output -> less write DMA).
        out_ref[...] = a[:, :out_ref.shape[1]].astype(out_ref.dtype)

    return kernel


def pack_params(params, o_dim, a_dim, dtype=jnp.bfloat16):
    """Pack all used ANet3 params into one (P1 + 2*128 + 8, 128) slab.

    Row layout:
      [0        : P1     )  W1  zero-padded (o_dim,64) -> (P1,128)
      [P1       : P1+128 )  W3  zero-padded (64,64)    -> (128,128)
      [P1+128   : P1+256 )  Wa  zero-padded (64,a_dim) -> (128,128)
      [P1+256   : P1+264 )  bias block: row 0=b1, row 1=b3, row 2=ba, rest 0
    P1 is o_dim rounded up to 32 so every slice start stays sublane-aligned
    for f32 and bf16 alike.  Zero padding keeps the math exact: padded lanes
    remain identically 0 through relu and tanh.
    """
    p1 = max(32, _round_up(o_dim, 32))
    rows = p1 + 2 * H_PAD + 8
    slab = jnp.zeros((rows, H_PAD), dtype)
    slab = slab.at[:o_dim, :REAL_H].set(params["W1"].astype(dtype))
    slab = slab.at[p1:p1 + REAL_H, :REAL_H].set(params["W3"].astype(dtype))
    slab = slab.at[p1 + H_PAD:p1 + H_PAD + REAL_H, :a_dim].set(
        params["Wa"].astype(dtype))
    b_off = p1 + 2 * H_PAD
    slab = slab.at[b_off + 0, :REAL_H].set(params["b1"].astype(dtype))
    slab = slab.at[b_off + 1, :REAL_H].set(params["b3"].astype(dtype))
    slab = slab.at[b_off + 2, :a_dim].set(params["ba"].astype(dtype))
    return slab, p1


def _xla_forward_from_slab(obs, slab, p1, a_dim):
    """Plain XLA fallback for tiny batches (pallas dispatch would dominate)."""
    B, o_dim = obs.shape
    x = obs
    if p1 != o_dim:
        x = jnp.pad(obs, ((0, 0), (0, p1 - o_dim)))
    x = x.astype(slab.dtype)
    w1 = slab[:p1]
    w3 = slab[p1:p1 + H_PAD]
    wa = slab[p1 + H_PAD:p1 + 2 * H_PAD]
    b = slab[p1 + 2 * H_PAD:p1 + 2 * H_PAD + 8].astype(jnp.float32)
    h = jnp.maximum(jnp.dot(x, w1, preferred_element_type=jnp.float32) + b[0], 0.0)
    h = jnp.maximum(
        jnp.dot(h.astype(slab.dtype), w3, preferred_element_type=jnp.float32) + b[1], 0.0)
    h = jnp.dot(h.astype(slab.dtype), wa, preferred_element_type=jnp.float32) + b[2]
    return jnp.tanh(h)[:, :a_dim]


def anet3_forward(obs, slab, p1, a_dim, *, tile_rows=4096,
                  min_pallas_batch=256, use_pallas=None):
    """obs: (B, o_dim); slab/p1 from pack_params; returns (B, a_dim) float32."""
    B, o_dim = obs.shape

    if use_pallas is None:
        use_pallas = B >= min_pallas_batch
    if not use_pallas:
        return _xla_forward_from_slab(obs, slab, p1, a_dim)

    in_itemsize = jnp.dtype(slab.dtype).itemsize
    out_itemsize = jnp.dtype(jnp.float32).itemsize
    slab_bytes = slab.size * in_itemsize

    # --- choose the batch tile: big (default 4096) to amortize the ~0.35us
    # per-grid-step overhead, capped so double-buffered obs+out tiles stay
    # inside a conservative 24 MiB budget (fits every generation's VMEM).
    row_bytes = p1 * in_itemsize + a_dim * out_itemsize
    tb_cap = max(8, ((24 << 20) // (2 * row_bytes)) // 8 * 8)
    tb_max = max(8, min(tile_rows, tb_cap))
    n_steps = -(-B // tb_max)                       # ceil
    tb = _round_up(-(-B // n_steps), 8)             # minimize padded rows
    bp = tb * n_steps

    obs_p = obs
    if bp != B or p1 != o_dim:
        obs_p = jnp.pad(obs, ((0, bp - B), (0, p1 - o_dim)))
    obs_p = obs_p.astype(slab.dtype)

    grid = (bp // tb,)

    # Explicit VMEM limit: double-buffered obs/out tiles + (double-buffered)
    # resident slab + headroom, clamped to a range safe on v5e/v6e/v7x.
    vmem_limit = 2 * tb * row_bytes + 2 * slab_bytes + (2 << 20)
    vmem_limit = int(min(max(vmem_limit, 16 << 20), 48 << 20))

    cost = pl.CostEstimate(
        flops=2 * bp * (p1 * H_PAD + H_PAD * H_PAD + H_PAD * H_PAD),
        transcendentals=bp * a_dim,
        bytes_accessed=(obs_p.size * in_itemsize
                        + slab_bytes
                        + bp * a_dim * out_itemsize),
    )

    out = pl.pallas_call(
        make_anet3_kernel(p1),
        out_shape=jax.ShapeDtypeStruct((bp, a_dim), jnp.float32),
        grid=grid,
        in_specs=[
            # obs tiles stream (auto double-buffered).
            pl.BlockSpec((tb, p1), lambda i: (i, 0)),
            # single param slab, resident in VMEM across all grid steps.
            pl.BlockSpec(slab.shape, lambda i: (0, 0)),
        ],
        # Narrow output: block last dim == full array last dim (a_dim).
        out_specs=pl.BlockSpec((tb, a_dim), lambda i: (i, 0)),
        compiler_params=pltpu.CompilerParams(
            dimension_semantics=("parallel",),
            vmem_limit_bytes=vmem_limit),
        cost_estimate=cost,
    )(obs_p, slab)

    return out[:B]


def init_params(key, o_dim, a_dim):
    """Mirror torch.nn.Linear default init: U[-1/sqrt(fan_in), +1/sqrt(fan_in)]."""
    ks = jax.random.split(key, 8)

    def linear(kw, kb, fan_in, fan_out):
        bound = 1.0 / jnp.sqrt(jnp.float32(fan_in))
        w = jax.random.uniform(kw, (fan_in, fan_out), jnp.float32, -bound, bound)
        b = jax.random.uniform(kb, (fan_out,), jnp.float32, -bound, bound)
        return w, b

    W1, b1 = linear(ks[0], ks[1], o_dim, REAL_H)
    W2, b2 = linear(ks[2], ks[3], REAL_H, REAL_H)   # fc2: defined but unused in forward
    W3, b3 = linear(ks[4], ks[5], REAL_H, REAL_H)
    Wa, ba = linear(ks[6], ks[7], REAL_H, a_dim)
    return {"W1": W1, "b1": b1, "W2": W2, "b2": b2,
            "W3": W3, "b3": b3, "Wa": Wa, "ba": ba}


def reference_forward(obs, p):
    h = jnp.maximum(obs @ p["W1"] + p["b1"], 0.0)
    h = jnp.maximum(h @ p["W3"] + p["b3"], 0.0)
    return jnp.tanh(h @ p["Wa"] + p["ba"])


if __name__ == "__main__":
    key = jax.random.PRNGKey(0)
    # Small demo shapes (production should batch to thousands of rows).
    o_dim, a_dim, batch = 20, 6, 16

    k_obs, k_params = jax.random.split(key)
    obs = jax.random.normal(k_obs, (batch, o_dim), dtype=jnp.float32)
    params = init_params(k_params, o_dim, a_dim)
    ref = reference_forward(obs, params)

    # f32 slab: exact lane-padding path.  Tolerance covers possible
    # reduced-precision (bf16-pass) default matmul on either side.
    slab32, p1 = pack_params(params, o_dim, a_dim, dtype=jnp.float32)
    out32 = jax.block_until_ready(
        anet3_forward(obs, slab32, p1, a_dim, use_pallas=True))
    assert out32.shape == (batch, a_dim)
    assert jnp.allclose(out32, ref, atol=3e-2), "f32 path mismatch"

    # bf16 slab (default): production path on v6e/v7x; looser tolerance
    # because activations are rounded to bf16 between layers.
    slab16, p1 = pack_params(params, o_dim, a_dim)
    out16 = jax.block_until_ready(
        anet3_forward(obs, slab16, p1, a_dim, use_pallas=True))
    assert out16.shape == (batch, a_dim)
    assert jnp.allclose(out16, ref, atol=6e-2), "bf16 path mismatch"

    print("KERNEL_OK")
</pallas_src>

<mosaic_0001>
module attributes {stable_mosaic.version = 11 : i64} {
  func.func @kernel(%arg0: i32, %arg1: memref<16x32xf32, #tpu.memory_space<vmem>>, %arg2: memref<296x128xf32, #tpu.memory_space<vmem>>, %arg3: memref<16x6xf32, #tpu.memory_space<vmem>>) attributes {dimension_semantics = [#tpu.dimension_semantics<parallel>], iteration_bounds = array<i64: 1>, scalar_prefetch = 0 : i64, scratch_operands = 0 : i64, tpu.core_type = #tpu.core_type<tc>, window_params = [{transform_indices = @transform_0, window_bounds = array<i64: 16, 32>}, {pipeline_mode = #tpu.pipeline_mode<synchronous>, transform_indices = @transform_1, window_bounds = array<i64: 296, 128>}, {transform_indices = @transform_2, window_bounds = array<i64: 16, 6>}]} {
    %c0 = arith.constant 0 : index
    %c0_0 = arith.constant 0 : index
    %0 = vector.load %arg1[%c0, %c0_0] : memref<16x32xf32, #tpu.memory_space<vmem>>, vector<16x32xf32>
    %c0_1 = arith.constant 0 : index
    %c0_2 = arith.constant 0 : index
    %1 = vector.load %arg2[%c0_1, %c0_2] : memref<296x128xf32, #tpu.memory_space<vmem>>, vector<32x128xf32>
    %c32 = arith.constant 32 : index
    %c0_3 = arith.constant 0 : index
    %2 = vector.load %arg2[%c32, %c0_3] : memref<296x128xf32, #tpu.memory_space<vmem>>, vector<128x128xf32>
    %c160 = arith.constant 160 : index
    %c0_4 = arith.constant 0 : index
    %3 = vector.load %arg2[%c160, %c0_4] : memref<296x128xf32, #tpu.memory_space<vmem>>, vector<128x128xf32>
    %c288 = arith.constant 288 : index
    %c0_5 = arith.constant 0 : index
    %4 = vector.load %arg2[%c288, %c0_5] : memref<296x128xf32, #tpu.memory_space<vmem>>, vector<8x128xf32>
    %5 = vector.extract_strided_slice %4 {offsets = [0, 0], sizes = [1, 128], strides = [1, 1]} : vector<8x128xf32> to vector<1x128xf32>
    %6 = vector.extract_strided_slice %4 {offsets = [1, 0], sizes = [1, 128], strides = [1, 1]} : vector<8x128xf32> to vector<1x128xf32>
    %7 = vector.extract_strided_slice %4 {offsets = [2, 0], sizes = [1, 128], strides = [1, 1]} : vector<8x128xf32> to vector<1x128xf32>
    %cst = arith.constant dense<0.000000e+00> : vector<16x128xf32>
    %8 = tpu.matmul %0, %1, %cst {dimension_numbers = #tpu.dot_dimension_numbers<[1], [0], [0], [1], [0, 0, 1, 1], [], []>} : vector<16x32xf32>, vector<32x128xf32>, vector<16x128xf32> -> vector<16x128xf32>
    %9 = vector.broadcast %5 : vector<1x128xf32> to vector<16x128xf32>
    %10 = arith.addf %8, %9 : vector<16x128xf32>
    %cst_6 = arith.constant 0.000000e+00 : f32
    %11 = vector.broadcast %cst_6 : f32 to vector<16x128xf32>
    %12 = arith.maximumf %10, %11 : vector<16x128xf32>
    %cst_7 = arith.constant dense<0.000000e+00> : vector<16x128xf32>
    %13 = tpu.matmul %12, %2, %cst_7 {dimension_numbers = #tpu.dot_dimension_numbers<[1], [0], [0], [1], [0, 0, 1, 1], [], []>} : vector<16x128xf32>, vector<128x128xf32>, vector<16x128xf32> -> vector<16x128xf32>
    %14 = vector.broadcast %6 : vector<1x128xf32> to vector<16x128xf32>
    %15 = arith.addf %13, %14 : vector<16x128xf32>
    %cst_8 = arith.constant 0.000000e+00 : f32
    %16 = vector.broadcast %cst_8 : f32 to vector<16x128xf32>
    %17 = arith.maximumf %15, %16 : vector<16x128xf32>
    %cst_9 = arith.constant dense<0.000000e+00> : vector<16x128xf32>
    %18 = tpu.matmul %17, %3, %cst_9 {dimension_numbers = #tpu.dot_dimension_numbers<[1], [0], [0], [1], [0, 0, 1, 1], [], []>} : vector<16x128xf32>, vector<128x128xf32>, vector<16x128xf32> -> vector<16x128xf32>
    %19 = vector.broadcast %7 : vector<1x128xf32> to vector<16x128xf32>
    %20 = arith.addf %18, %19 : vector<16x128xf32>
    %21 = math.tanh %20 : vector<16x128xf32>
    %22 = vector.extract_strided_slice %21 {offsets = [0, 0], sizes = [16, 6], strides = [1, 1]} : vector<16x128xf32> to vector<16x6xf32>
    %c0_10 = arith.constant 0 : index
    %c0_11 = arith.constant 0 : index
    %23 = vector.load %arg3[%c0_10, %c0_11] : memref<16x6xf32, #tpu.memory_space<vmem>>, vector<16x6xf32>
    tpu.vector_store %arg3[%c0_10, %c0_11], %22 {strides = array<i32>} : memref<16x6xf32, #tpu.memory_space<vmem>>, vector<16x6xf32>,
    return
  }
  func.func @transform_0(%arg0: i32) -> (i32, i32) {
    %c0_i32 = arith.constant 0 : i32
    %c0_i32_0 = arith.constant 0 : i32
    return %arg0, %c0_i32 : i32, i32
  }
  func.func @transform_1(%arg0: i32) -> (i32, i32) {
    %c0_i32 = arith.constant 0 : i32
    %c0_i32_0 = arith.constant 0 : i32
    %c0_i32_1 = arith.constant 0 : i32
    return %c0_i32, %c0_i32_0 : i32, i32
  }
  func.func @transform_2(%arg0: i32) -> (i32, i32) {
    %c0_i32 = arith.constant 0 : i32
    %c0_i32_0 = arith.constant 0 : i32
    return %arg0, %c0_i32 : i32, i32
  }
}

</mosaic_0001>

<bundles_post_ra>
// kernel: tpu_custom_call.1
= control target key start
LH: loop header
LB: loop body
LE: loop exit
PB: predicated region body
PF: predicated region fallthrough
CT: control target
= control target key end

     0   :  { %7 = vsyncpa [#allocation3], 0  ;;  %s547_s0 = inlined_call_operand.hbm [shape: f32[16,32], index: 0, kind: input, shape index: {}]   ;;  %s548_s1 = inlined_call_operand.hbm [shape: f32[296,128], index: 1, kind: input, shape index: {}]   ;;  %s549_s2 = inlined_call_operand.vmem [shape: f32[16,6], index: 2, kind: output, shape index: {}]  }
   0x1   :  { %8 = vsyncpa [#allocation5], 0  ;;  %s514_s9 = smov [#allocation2]  }
   0x2   :  { %s14_s10 = sshll.u32 %s514_s9, 4  ;;  %s15_s10 = int_to_ptr.vmem [resolvable:$true] %s14_s10 }
   0x3   :  { %s478_s11 = scalar_lea.vmem %s15_s10, 256  ;;  %p483_p1 = scmp.lt.s32.totalorder %s15_s10, %s15_s10 }
   0x4   :  { %p479_p0 = scmp.ne.s32.totalorder %s15_s10, %s478_s11  ;;  %p484_p2 = scmp.lt.s32.totalorder %s478_s11, %s478_s11 }
   0x6   :  { %p485_p3 = por %p484_p2, %p483_p1 }
   0x8   :  { %p486_p4 = pnand %p485_p3, %p479_p0 }
   0xa   :  { %489 = shalt.err (!%p486_p4)
}
   0xb   :  { %s515_s12 = smov 128   ;;  %s516_s13 = smov 8  }
   0xc   :  { %20 = dma.hbm_to_vmem [thread:$0]  %s547_s0, 256, %s15_s10, [#allocation3], %s515_s12, %s515_s12, %s516_s13  }
   0xd   :  { %s517_s16 = smov [#allocation4]  }
   0xe   :  { %s26_s17 = sshll.u32 %s517_s16, 4  ;;  %s27_s17 = int_to_ptr.vmem [resolvable:$true] %s26_s17 }
   0xf   :  { %s498_s18 = scalar_lea.vmem %s27_s17, 4736  ;;  %p503_p6 = scmp.lt.s32.totalorder %s27_s17, %s27_s17 }
  0x10   :  { %p499_p5 = scmp.ne.s32.totalorder %s27_s17, %s498_s18  ;;  %p504_p7 = scmp.lt.s32.totalorder %s498_s18, %s498_s18 }
  0x12   :  { %p505_p8 = por %p504_p7, %p503_p6 }
  0x14   :  { %p506_p9 = pnand %p505_p8, %p499_p5 }
  0x16   :  { %509 = shalt.err (!%p506_p9)
}
  0x17   :  { %32 = dma.hbm_to_vmem [thread:$0]  %s548_s1, 4736, %s27_s17, [#allocation5], %s515_s12, %s515_s12, %s516_s13  }
  0x18   :  { %510 = dma.done.wait [#allocation3], 256  }
  0x19   :  { %511 = vsyncadd [#allocation3], 4294967040 }
  0x1a   :  { %512 = dma.done.wait [#allocation5], 4736  }
  0x1b   :  { %513 = vsyncadd [#allocation5], 4294962560  ;;  %vm82_vm0 = vcmask 261120   ;;  %v44_v0 = vld [vmem:[#allocation4 + $0x18] sm:$0xff]  ;;  %v43_v1 = vld [vmem:[#allocation4 + $0x10] sm:$0xff]  ;;  %v78_v34 = vlaneseq  ;;  %vm328_vm1 = vcmask 48128  }
  0x1c   :  { %381 = vmatprep.subr.mxu0 %v44_v0  ;;  %v39_v2 = vld [vmem:[#allocation2] sm:$0xff]  ;;  %v42_v3 = vld [vmem:[#allocation4 + $0x8] sm:$0xff]  ;;  %v60_v4 = vld [vmem:[#allocation4 + $0x98] sm:$0xff] }
  0x1d   :  { %382 = vmatpush3.msra.mxu0 %v44_v0  ;;  %389 = vmatprep.mubr.msk.f32.mxu0 %vm82_vm0, %v39_v2  ;;  %v59_v5 = vld [vmem:[#allocation4 + $0x90] sm:$0xff]  ;;  %v41_v6 = vld [vmem:[#allocation4] sm:$0xff]  ;;  %v58_v7 = vld [vmem:[#allocation4 + $0x88] sm:$0xff]  ;;  %v79_v35 = vshrl.u32 %v78_v34, 7 }
  0x1e   :  { %383 = vmatprep.subr.mxu0 %v43_v1  ;;  %392 = vmatprep.subr.mxu1 %v60_v4  ;;  %v40_v8 = vld [vmem:[#allocation2 + $0x8] sm:$0xff]  ;;  %v57_v9 = vld [vmem:[#allocation4 + $0x80] sm:$0xff]  ;;  %v55_v11 = vld [vmem:[#allocation4 + $0x70] sm:$0xff] }
  0x1f   :  { %384 = vmatpush3.msra.mxu0 %v43_v1  ;;  %393 = vmatpush3.msra.mxu1 %v60_v4  ;;  %v56_v10 = vld [vmem:[#allocation4 + $0x78] sm:$0xff]  ;;  %v54_v12 = vld [vmem:[#allocation4 + $0x68] sm:$0xff]  ;;  %v53_v13 = vld [vmem:[#allocation4 + $0x60] sm:$0xff]  ;;  %v80_v36 = vsub.s32 0, %v79_v35  ;;  %v168_v49 = vsub.s32 1, %v79_v35  ;;  %v249_v57 = vsub.s32 2, %v79_v35 }
  0x20   :  { %385 = vmatprep.subr.mxu0 %v42_v3  ;;  %394 = vmatprep.subr.mxu1 %v59_v5  ;;  %v52_v14 = vld [vmem:[#allocation4 + $0x58] sm:$0xff]  ;;  %v51_v15 = vld [vmem:[#allocation4 + $0x50] sm:$0xff]  ;;  %v50_v16 = vld [vmem:[#allocation4 + $0x48] sm:$0xff] }
  0x21   :  { %386 = vmatpush3.msra.mxu0 %v42_v3  ;;  %395 = vmatpush3.msra.mxu1 %v59_v5  ;;  %v49_v17 = vld [vmem:[#allocation4 + $0x40] sm:$0xff]  ;;  %v48_v18 = vld [vmem:[#allocation4 + $0x38] sm:$0xff]  ;;  %v47_v19 = vld [vmem:[#allocation4 + $0x30] sm:$0xff] }
  0x22   :  { %387 = vmatprep.subr.mxu0 %v41_v6  ;;  %396 = vmatprep.subr.mxu1 %v58_v7  ;;  %v46_v20 = vld [vmem:[#allocation4 + $0x28] sm:$0xff]  ;;  %v45_v21 = vld [vmem:[#allocation4 + $0x20] sm:$0xff]  ;;  %v76_v22 = vld [vmem:[#allocation4 + $0x118] sm:$0xff] }
  0x23   :  { %388 = vmatpush3.msra.mxu0 %v41_v6  ;;  %397 = vmatpush3.msra.mxu1 %v58_v7  ;;  %v75_v23 = vld [vmem:[#allocation4 + $0x110] sm:$0xff]  ;;  %v74_v24 = vld [vmem:[#allocation4 + $0x108] sm:$0xff]  ;;  %v73_v25 = vld [vmem:[#allocation4 + $0x100] sm:$0xff] }
  0x24   :  { %390 = vmatmul.mubr.msk.f32.vlgmr.msra.gmra.mxu0 %vm82_vm0, %v40_v8  ;;  %398 = vmatprep.subr.mxu1 %v57_v9  ;;  %v72_v26 = vld [vmem:[#allocation4 + $0xf8] sm:$0xff]  ;;  %v71_v27 = vld [vmem:[#allocation4 + $0xf0] sm:$0xff]  ;;  %v70_v28 = vld [vmem:[#allocation4 + $0xe8] sm:$0xff] }
  0x25   :  { %399 = vmatpush3.msra.mxu1 %v57_v9  ;;  %427 = vmatprep.subr.mxu0 %v76_v22  ;;  %v69_v29 = vld [vmem:[#allocation4 + $0xe0] sm:$0xff]  ;;  %v68_v30 = vld [vmem:[#allocation4 + $0xd8] sm:$0xff]  ;;  %v67_v31 = vld [vmem:[#allocation4 + $0xd0] sm:$0xff] }
  0x26   :  { %400 = vmatprep.subr.mxu1 %v56_v10  ;;  %428 = vmatpush3.msra.mxu0 %v76_v22  ;;  %v66_v32 = vld [vmem:[#allocation4 + $0xc8] sm:$0xff]  ;;  %v65_v33 = vld [vmem:[#allocation4 + $0xc0] sm:$0xff]  ;;  %v64_v45 = vld [vmem:[#allocation4 + $0xb8] sm:$0xff] }
  0x27   :  { %401 = vmatpush3.msra.mxu1 %v56_v10  ;;  %429 = vmatprep.subr.mxu0 %v75_v23  ;;  %v77_v37 = vld [vmem:[#allocation4 + $0x120] sm:$0xff]  ;;  %v63_v46 = vld [vmem:[#allocation4 + $0xb0] sm:$0xff]  ;;  %v62_v47 = vld [vmem:[#allocation4 + $0xa8] sm:$0xff] }
  0x28   :  { %402 = vmatprep.subr.mxu1 %v55_v11  ;;  %430 = vmatpush3.msra.mxu0 %v75_v23  ;;  %v81_v38 = vrot.slane %v77_v37, %v80_v36  ;;  %v61_v48 = vld [vmem:[#allocation4 + $0xa0] sm:$0xff]  ;;  %v169_v50 = vrot.slane %v77_v37, %v168_v49  ;;  %v250_v58 = vrot.slane %v77_v37, %v249_v57 }
  0x29   :  { %403 = vmatpush3.msra.mxu1 %v55_v11  ;;  %431 = vmatprep.subr.mxu0 %v74_v24 }
  0x2a   :  { %404 = vmatprep.subr.mxu1 %v54_v12  ;;  %432 = vmatpush3.msra.mxu0 %v74_v24 }
  0x2b   :  { %405 = vmatpush3.msra.mxu1 %v54_v12  ;;  %433 = vmatprep.subr.mxu0 %v73_v25 }
  0x2c   :  { %406 = vmatprep.subr.mxu1 %v53_v13  ;;  %434 = vmatpush3.msra.mxu0 %v73_v25 }
  0x2d   :  { %407 = vmatpush3.msra.mxu1 %v53_v13  ;;  %435 = vmatprep.subr.mxu0 %v72_v26 }
  0x2e   :  { %408 = vmatprep.subr.mxu1 %v52_v14  ;;  %436 = vmatpush3.msra.mxu0 %v72_v26 }
  0x2f   :  { %409 = vmatpush3.msra.mxu1 %v52_v14  ;;  %437 = vmatprep.subr.mxu0 %v71_v27 }
  0x30   :  { %410 = vmatprep.subr.mxu1 %v51_v15  ;;  %438 = vmatpush3.msra.mxu0 %v71_v27 }
  0x31   :  { %411 = vmatpush3.msra.mxu1 %v51_v15  ;;  %439 = vmatprep.subr.mxu0 %v70_v28 }
  0x32   :  { %412 = vmatprep.subr.mxu1 %v50_v16  ;;  %440 = vmatpush3.msra.mxu0 %v70_v28 }
  0x33   :  { %413 = vmatpush3.msra.mxu1 %v50_v16  ;;  %441 = vmatprep.subr.mxu0 %v69_v29 }
  0x34   :  { %414 = vmatprep.subr.mxu1 %v49_v17  ;;  %442 = vmatpush3.msra.mxu0 %v69_v29 }
  0x35   :  { %415 = vmatpush3.msra.mxu1 %v49_v17  ;;  %443 = vmatprep.subr.mxu0 %v68_v30 }
  0x36   :  { %416 = vmatprep.subr.mxu1 %v48_v18  ;;  %444 = vmatpush3.msra.mxu0 %v68_v30 }
  0x37   :  { %417 = vmatpush3.msra.mxu1 %v48_v18  ;;  %445 = vmatprep.subr.mxu0 %v67_v31 }
  0x38   :  { %418 = vmatprep.subr.mxu1 %v47_v19  ;;  %446 = vmatpush3.msra.mxu0 %v67_v31 }
  0x39   :  { %419 = vmatpush3.msra.mxu1 %v47_v19  ;;  %447 = vmatprep.subr.mxu0 %v66_v32 }
  0x3a   :  { %420 = vmatprep.subr.mxu1 %v46_v20  ;;  %448 = vmatpush3.msra.mxu0 %v66_v32 }
  0x3b   :  { %421 = vmatpush3.msra.mxu1 %v46_v20  ;;  %449 = vmatprep.subr.mxu0 %v65_v33 }
  0x3c   :  { %422 = vmatprep.subr.mxu1 %v45_v21  ;;  %450 = vmatpush3.msra.mxu0 %v65_v33 }
  0x3d   :  { %423 = vmatpush3.msra.mxu1 %v45_v21  ;;  %451 = vmatprep.subr.mxu0 %v64_v45 }
  0x3e   :  { %452 = vmatpush3.msra.mxu0 %v64_v45 }
  0x3f   :  { %453 = vmatprep.subr.mxu0 %v63_v46 }
  0x40   :  { %454 = vmatpush3.msra.mxu0 %v63_v46 }
  0x41   :  { %455 = vmatprep.subr.mxu0 %v62_v47 }
  0x42   :  { %456 = vmatpush3.msra.mxu0 %v62_v47 }
  0x43   :  { %457 = vmatprep.subr.mxu0 %v61_v48 }
  0x44   :  { %458 = vmatpush3.msra.mxu0 %v61_v48 }
  0xe4   :  { %v391_v39 = vpop.f32.mrf.mxu0 }
  0xe5   :  { %v161_v40 = vadd.f32 %v391_v39, %v81_v38 }
  0xe6   :  { %v155_v41 = vpop.f32.mrf.mxu0 }
  0xe7   :  { %v156_v42 = vadd.f32 %v155_v41, %v81_v38  ;;  %v165_v44 = vmax.f32 %v161_v40, 0.0 }
  0xe9   :  { %v164_v43 = vmax.f32 %v156_v42, 0.0 }
  0xeb   :  { %424 = vmatprep.mubr.f32.mxu1 %v164_v43 }
  0xec   :  { %425 = vmatmul.mubr.f32.vlgmr.msra.gmra.mxu1 %v165_v44 }
 0x1ac   :  { %v426_v51 = vpop.f32.mrf.mxu1 }
 0x1ad   :  { %v242_v52 = vadd.f32 %v426_v51, %v169_v50 }
 0x1ae   :  { %v236_v53 = vpop.f32.mrf.mxu1 }
 0x1af   :  { %v237_v54 = vadd.f32 %v236_v53, %v169_v50  ;;  %v246_v56 = vmax.f32 %v242_v52, 0.0 }
 0x1b1   :  { %v245_v55 = vmax.f32 %v237_v54, 0.0 }
 0x1b3   :  { %459 = vmatprep.mubr.f32.mxu0 %v245_v55 }
 0x1b4   :  { %460 = vmatmul.mubr.f32.vlgmr.msra.gmra.mxu0 %v246_v56 }
 0x274   :  { %v461_v59 = vpop.f32.mrf.mxu0 }
 0x275   :  { %v323_v60 = vadd.f32 %v461_v59, %v250_v58 }
 0x276   :  { %v317_v61 = vpop.f32.mrf.mxu0 }
 0x277   :  { %466 = vtanh.f32 %v323_v60  ;;  %v318_v62 = vadd.f32 %v317_v61, %v250_v58 }
 0x279   :  { %468 = vtanh.f32 %v318_v62 }
 0x284   :  { %v467_v63 = vpop.eup %466 }
 0x285   :  { %330 = vst.msk [vmem:[%s549_s2 + $0x8] sm:$0xff] %vm328_vm1, %v467_v63 }
 0x286   :  { %v469_v0 = vpop.eup %468 }
 0x287   :  { %329 = vst.msk [vmem:[%s549_s2] sm:$0xff] %vm328_vm1, %v469_v0 }
 0x288   :  { %335 = vsyncpa [#allocation3], 1 }
 0x289   :  { %336 = vsyncpa [#allocation5], 1 }

</bundles_post_ra>
